<compile_context>
chip_gen: v5e
topology: v5e:2x2
jax: 0.10.0
libtpu: 0.0.40
codegen_flags: <defaults>
</compile_context>

<pallas_src>
import functools

import jax
import jax.numpy as jnp
from jax.experimental import pallas as pl
from jax.experimental.pallas import tpu as pltpu


def _round_up(x, m):
    return ((x + m - 1) // m) * m


def _policy_kernel(x_ref, w_ref, b_ref, eps_ref, out_ref, *,
                   num_actions, log_std_min, log_std_max):
    """Fused: one (tm,H)@(H,2A) matmul + bias + clamp + exp + rsample."""
    A = num_actions

    # Single MXU pass over x for BOTH heads; accumulate in f32.
    acc = jnp.dot(x_ref[...], w_ref[...],
                  preferred_element_type=jnp.float32)            # (tm, 2A) f32
    acc = acc + b_ref[...].astype(jnp.float32)

    mu = acc[:, :A]                                              # loc head
    log_std = acc[:, A:]                                         # state-dependent std head

    # scale = exp(clamp(log_std, min, max)) -- f32 epilogue (exp rides the EUP).
    scale = jnp.exp(jnp.clip(log_std, log_std_min, log_std_max))

    # Reparameterized Normal sample (rsample): action = mu + scale * eps.
    action = mu + scale * eps_ref[...].astype(jnp.float32)

    # One fused output slab: [mu | scale | action] -> single output DMA stream.
    out_ref[...] = jnp.concatenate([mu, scale, action], axis=-1)


def policy_net_forward(core_output, w_mu, b_mu, w_std, b_std, eps, *,
                       log_std_min=-10.0, log_std_max=2.0, max_row_tile=512):
    """JAX/Pallas equivalent of PolicyNet.forward for learn_std=True,
    state_dependent_std=True. Returns ((mu, scale), action), each (T, B, A)."""
    T, B, H = core_output.shape
    A = w_mu.shape[1]
    TB = T * B

    dtype = core_output.dtype
    x = core_output.reshape(TB, H)                 # no dtype cast in the wrapper
    eps2d = eps.reshape(TB, A)

    # One-time weight prep (in production, pre-fuse once outside the hot path).
    w = jnp.concatenate([w_mu, w_std], axis=1).astype(dtype)             # (H, 2A)
    b = jnp.concatenate([b_mu, b_std], axis=0).reshape(1, 2 * A).astype(dtype)

    # Row tile: multiple of 8 sublanes, capped so double-buffered
    # (x + eps + out) tiles stay far under VMEM even on v7x (64 MiB).
    tm = min(max_row_tile, _round_up(TB, 8))
    tb_pad = _round_up(TB, tm)
    if tb_pad != TB:
        x = jnp.pad(x, ((0, tb_pad - TB), (0, 0)))
        eps2d = jnp.pad(eps2d, ((0, tb_pad - TB), (0, 0)))
    grid = tb_pad // tm

    kernel = functools.partial(
        _policy_kernel, num_actions=A,
        log_std_min=float(log_std_min), log_std_max=float(log_std_max))

    out = pl.pallas_call(
        kernel,
        out_shape=jax.ShapeDtypeStruct((tb_pad, 3 * A), jnp.float32),
        grid_spec=pl.GridSpec(
            grid=(grid,),
            in_specs=[
                pl.BlockSpec((tm, H), lambda i: (i, 0)),          # x    (pipelined)
                pl.BlockSpec((H, 2 * A), lambda i: (0, 0)),       # W    (VMEM-resident)
                pl.BlockSpec((1, 2 * A), lambda i: (0, 0)),       # b    (VMEM-resident)
                pl.BlockSpec((tm, A), lambda i: (i, 0)),          # eps  (pipelined)
            ],
            out_specs=pl.BlockSpec((tm, 3 * A), lambda i: (i, 0)),
        ),
        compiler_params=pltpu.CompilerParams(
            dimension_semantics=("parallel",),   # shards across 2 TCs on v7x
            vmem_limit_bytes=32 * 1024 * 1024,   # explicit, with headroom on v7x
        ),
    )(x, w, b, eps2d)

    mu = out[:TB, :A].reshape(T, B, A)
    scale = out[:TB, A:2 * A].reshape(T, B, A)
    action = out[:TB, 2 * A:].reshape(T, B, A)
    return (mu, scale), action


if __name__ == "__main__":
    # Small shapes consistent with the module's forward: (T, B, core_output_size).
    T, B, H, A = 8, 2, 32, 8

    key = jax.random.PRNGKey(0)
    k_x, k_wmu, k_bmu, k_wstd, k_bstd, k_eps = jax.random.split(key, 6)

    # Inputs in bf16 (native MXU input dtype on v5e/v6e/v7x) -- no wrapper upcasts.
    core_output = jax.random.normal(k_x, (T, B, H)).astype(jnp.bfloat16)

    # Deterministic synthetic parameters (nn.Linear(H, A) shapes, stored transposed).
    lim = 1.0 / (H ** 0.5)
    w_mu = jax.random.uniform(k_wmu, (H, A), minval=-lim, maxval=lim).astype(jnp.bfloat16)
    b_mu = jax.random.uniform(k_bmu, (A,), minval=-lim, maxval=lim).astype(jnp.bfloat16)
    w_std = jax.random.uniform(k_wstd, (H, A), minval=-lim, maxval=lim).astype(jnp.bfloat16)
    b_std = jax.random.uniform(k_bstd, (A,), minval=-lim, maxval=lim).astype(jnp.bfloat16)

    # Noise for the reparameterized sample (rsample), drawn outside the kernel.
    eps = jax.random.normal(k_eps, (T, B, A)).astype(jnp.bfloat16)

    (mu, scale), action = policy_net_forward(
        core_output, w_mu, b_mu, w_std, b_std, eps,
        log_std_min=-10.0, log_std_max=2.0)
    jax.block_until_ready((mu, scale, action))

    # Pure-JAX reference on the same bf16-rounded values, computed in f32.
    x2d = core_output.reshape(T * B, H).astype(jnp.float32)
    wm, bm = w_mu.astype(jnp.float32), b_mu.astype(jnp.float32)
    ws, bs = w_std.astype(jnp.float32), b_std.astype(jnp.float32)
    e2d = eps.reshape(T * B, A).astype(jnp.float32)
    mu_ref = x2d @ wm + bm[None, :]
    scale_ref = jnp.exp(jnp.clip(x2d @ ws + bs[None, :], -10.0, 2.0))
    act_ref = mu_ref + scale_ref * e2d
    assert jnp.allclose(mu, mu_ref.reshape(T, B, A), atol=1e-3, rtol=1e-3)
    assert jnp.allclose(scale, scale_ref.reshape(T, B, A), atol=1e-3, rtol=1e-3)
    assert jnp.allclose(action, act_ref.reshape(T, B, A), atol=1e-3, rtol=1e-3)
    assert mu.shape == (T, B, A) and scale.shape == (T, B, A) and action.shape == (T, B, A)

    # TODO(synk): `deterministic=True` branch raises NotImplementedError in the
    # reference module, so it is intentionally not implemented here.
    # TODO(synk): learn_std=None and state_dependent_std=False variants are not
    # implemented; only the learn_std=True, state_dependent_std=True config is.
    print("KERNEL_OK")
</pallas_src>

<mosaic_0001>
module attributes {stable_mosaic.version = 11 : i64} {
  func.func @_policy_kernel(%arg0: i32, %arg1: memref<16x32xbf16, #tpu.memory_space<vmem>>, %arg2: memref<32x16xbf16, #tpu.memory_space<vmem>>, %arg3: memref<1x16xbf16, #tpu.memory_space<vmem>>, %arg4: memref<16x8xbf16, #tpu.memory_space<vmem>>, %arg5: memref<16x24xf32, #tpu.memory_space<vmem>>) attributes {dimension_semantics = [#tpu.dimension_semantics<parallel>], iteration_bounds = array<i64: 1>, scalar_prefetch = 0 : i64, scratch_operands = 0 : i64, tpu.core_type = #tpu.core_type<tc>, window_params = [{transform_indices = @transform_0, window_bounds = array<i64: 16, 32>}, {pipeline_mode = #tpu.pipeline_mode<synchronous>, transform_indices = @transform_1, window_bounds = array<i64: 32, 16>}, {pipeline_mode = #tpu.pipeline_mode<synchronous>, transform_indices = @transform_2, window_bounds = array<i64: 1, 16>}, {transform_indices = @transform_3, window_bounds = array<i64: 16, 8>}, {transform_indices = @transform_4, window_bounds = array<i64: 16, 24>}]} {
    %c0 = arith.constant 0 : index
    %c0_0 = arith.constant 0 : index
    %0 = vector.load %arg1[%c0, %c0_0] : memref<16x32xbf16, #tpu.memory_space<vmem>>, vector<16x32xbf16>
    %c0_1 = arith.constant 0 : index
    %c0_2 = arith.constant 0 : index
    %1 = vector.load %arg2[%c0_1, %c0_2] : memref<32x16xbf16, #tpu.memory_space<vmem>>, vector<32x16xbf16>
    %cst = arith.constant dense<0.000000e+00> : vector<16x16xf32>
    %2 = tpu.matmul %0, %1, %cst {dimension_numbers = #tpu.dot_dimension_numbers<[1], [0], [0], [1], [0, 0, 1, 1], [], []>} : vector<16x32xbf16>, vector<32x16xbf16>, vector<16x16xf32> -> vector<16x16xf32>
    %c0_3 = arith.constant 0 : index
    %c0_4 = arith.constant 0 : index
    %3 = vector.load %arg3[%c0_3, %c0_4] : memref<1x16xbf16, #tpu.memory_space<vmem>>, vector<1x16xbf16>
    %4 = arith.extf %3 : vector<1x16xbf16> to vector<1x16xf32>
    %5 = vector.broadcast %4 : vector<1x16xf32> to vector<16x16xf32>
    %6 = arith.addf %2, %5 : vector<16x16xf32>
    %7 = vector.extract_strided_slice %6 {offsets = [0, 0], sizes = [16, 8], strides = [1, 1]} : vector<16x16xf32> to vector<16x8xf32>
    %8 = vector.extract_strided_slice %6 {offsets = [0, 8], sizes = [16, 8], strides = [1, 1]} : vector<16x16xf32> to vector<16x8xf32>
    %cst_5 = arith.constant -1.000000e+01 : f32
    %cst_6 = arith.constant 2.000000e+00 : f32
    %9 = vector.broadcast %cst_5 : f32 to vector<16x8xf32>
    %10 = arith.maximumf %9, %8 : vector<16x8xf32>
    %11 = vector.broadcast %cst_6 : f32 to vector<16x8xf32>
    %12 = arith.minimumf %11, %10 : vector<16x8xf32>
    %13 = math.exp %12 : vector<16x8xf32>
    %c0_7 = arith.constant 0 : index
    %c0_8 = arith.constant 0 : index
    %14 = vector.load %arg4[%c0_7, %c0_8] : memref<16x8xbf16, #tpu.memory_space<vmem>>, vector<16x8xbf16>
    %15 = arith.extf %14 : vector<16x8xbf16> to vector<16x8xf32>
    %16 = arith.mulf %13, %15 : vector<16x8xf32>
    %17 = arith.addf %7, %16 : vector<16x8xf32>
    %18 = tpu.concatenate %7, %13, %17 in 1 : vector<16x8xf32>, vector<16x8xf32>, vector<16x8xf32> -> vector<16x24xf32>
    %c0_9 = arith.constant 0 : index
    %c0_10 = arith.constant 0 : index
    %19 = vector.load %arg5[%c0_9, %c0_10] : memref<16x24xf32, #tpu.memory_space<vmem>>, vector<16x24xf32>
    tpu.vector_store %arg5[%c0_9, %c0_10], %18 {strides = array<i32>} : memref<16x24xf32, #tpu.memory_space<vmem>>, vector<16x24xf32>,
    return
  }
  func.func @transform_0(%arg0: i32) -> (i32, i32) {
    %c0_i32 = arith.constant 0 : i32
    %c0_i32_0 = arith.constant 0 : i32
    return %arg0, %c0_i32 : i32, i32
  }
  func.func @transform_1(%arg0: i32) -> (i32, i32) {
    %c0_i32 = arith.constant 0 : i32
    %c0_i32_0 = arith.constant 0 : i32
    %c0_i32_1 = arith.constant 0 : i32
    return %c0_i32, %c0_i32_0 : i32, i32
  }
  func.func @transform_2(%arg0: i32) -> (i32, i32) {
    %c0_i32 = arith.constant 0 : i32
    %c0_i32_0 = arith.constant 0 : i32
    %c0_i32_1 = arith.constant 0 : i32
    return %c0_i32, %c0_i32_0 : i32, i32
  }
  func.func @transform_3(%arg0: i32) -> (i32, i32) {
    %c0_i32 = arith.constant 0 : i32
    %c0_i32_0 = arith.constant 0 : i32
    return %arg0, %c0_i32 : i32, i32
  }
  func.func @transform_4(%arg0: i32) -> (i32, i32) {
    %c0_i32 = arith.constant 0 : i32
    %c0_i32_0 = arith.constant 0 : i32
    return %arg0, %c0_i32 : i32, i32
  }
}

</mosaic_0001>

<bundles_post_ra>
// kernel: tpu_custom_call.1
= control target key start
LH: loop header
LB: loop body
LE: loop exit
PB: predicated region body
PF: predicated region fallthrough
CT: control target
= control target key end

     0   :  { %s240_s0 = inlined_call_operand.vmem [shape: bf16[16,32], index: 0, kind: input, shape index: {}]   ;;  %s241_s1 = inlined_call_operand.vmem [shape: bf16[32,16], index: 1, kind: input, shape index: {}]   ;;  %s242_s2 = inlined_call_operand.vmem [shape: bf16[1,16], index: 2, kind: input, shape index: {}]   ;;  %s243_s3 = inlined_call_operand.vmem [shape: bf16[16,8], index: 3, kind: input, shape index: {}]   ;;  %s244_s4 = inlined_call_operand.hbm [shape: f32[16,24], index: 4, kind: output, shape index: {}]  }
   0x1   :  { %v145_v0 = vld [vmem:[%s241_s1 + $0x8] sm:$0xff]  ;;  %v147_v1 = vld [vmem:[%s243_s3] sm:$0xff]  }
   0x2   :  { %9 = vsyncpa [#allocation3], 0  ;;  %55 = vmatpush.bf16.msra.mxu0 %v145_v0  ;;  %v144_v2 = vld [vmem:[%s241_s1] sm:$0xff]  ;;  %v148_v3 = vunpack.c.l.bf16 %v147_v1  ;;  %v149_v4 = vunpack.c.h.bf16 %v147_v1  ;;  %vm45_vm0 = vcmask 261120   ;;  %s190_s23 = smov 8   ;;  %s192_s1 = smov 16  }
   0x3   :  { %v143_v6 = vld [vmem:[%s240_s0] sm:$0xff]  ;;  %s191_s0 = smov 120   ;;  %vm106_vm1 = vcmask 130048   ;;  %vm103_vm2 = vcmask 64512   ;;  %vm109_vm3 = vcmask 195584   ;;  %s118_s28 = sshll.u32 %s244_s4, 4  ;;  %s119_s28 = int_to_ptr.hbm [resolvable:$true] %s118_s28 }
   0x4   :  { %v155_v5 = vpack.i.bf16 %v149_v4, %v148_v3  ;;  %v25_v7 = vld [vmem:[%s242_s2] sm:$0x1]  ;;  %s193_s2 = smov [#allocation2]   ;;  %s194_s29 = smov 128  }
   0x5   :  { %v26_v8 = vunpack.c.l.bf16 %v25_v7  ;;  %s116_s25 = sshll.u32 %s193_s2, 4  ;;  %s117_s25 = int_to_ptr.vmem [resolvable:$true] %s116_s25 }
   0x6   :  { %56 = vmatpush.bf16.msra.mxu0 %v144_v2  ;;  %156 = vrot.lane.b32.xlu0 %v155_v5, %s190_s23 }
   0x7   :  { %v27_v9 = vperm.slane %v26_v8, 0 }
   0x9   :  { %142 = vmatmul.msk.bf16.vlgmr.msra.gmra.mxu0 %vm45_vm0, %v143_v6 }
  0x78   :  { %v157_v17 = vpop.permute.xlu0 %156 }
  0x79   :  { %v158_v19 = vunpack.i.l.bf16 %v157_v17  ;;  %v159_v24 = vunpack.i.h.bf16 %v157_v17 }
  0x86   :  { %v58_v10 = vpop.f32.mrf.mxu0 }
  0x87   :  { %v59_v11 = vadd.f32 %v58_v10, %v27_v9 }
  0x89   :  { %v63_v12 = vmax.f32 %v59_v11, -10.0 }
  0x8b   :  { %v65_v13 = vmin.f32 %v63_v12, 2.0 }
  0x8d   :  { %v67_v14 = vmul.f32 1.442695, %v65_v13 }
  0x8e   :  { %v60_v15 = vpop.f32.mrf.mxu0 }
  0x8f   :  { %160 = vpow2.f32 %v67_v14  ;;  %v61_v16 = vadd.f32 %v60_v15, %v27_v9 }
  0x91   :  { %v64_v18 = vmax.f32 %v61_v16, -10.0 }
  0x93   :  { %v66_v20 = vmin.f32 %v64_v18, 2.0 }
  0x95   :  { %v161_v21 = vpop.eup %160  ;;  %v69_v22 = vmul.f32 1.442695, %v66_v20 }
  0x96   :  { %v83_v23 = vmul.f32 %v161_v21, %v158_v19  ;;  %v104_v34 = vsel %vm103_vm2, %v59_v11, %v161_v21 }
  0x97   :  { %162 = vpow2.f32 %v69_v22 }
  0x98   :  { %87 = vrot.lane.b32.xlu0 %v83_v23, %s191_s0 }
  0x9d   :  { %v163_v25 = vpop.eup %162 }
  0x9e   :  { %v84_v26 = vmul.f32 %v163_v25, %v159_v24  ;;  %v105_v31 = vsel %vm103_vm2, %v61_v16, %v163_v25 }
  0xa0   :  { %89 = vrot.lane.b32.xlu1 %v84_v26, %s191_s0 }
 0x10a   :  { %v88_v27 = vpop.permute.xlu0 %87 }
 0x10b   :  { %v93_v28 = vadd.f32 %v88_v27, %v59_v11 }
 0x10d   :  { %97 = vrot.lane.b32.xlu1 %v93_v28, %s192_s1 }
 0x112   :  { %v90_v29 = vpop.permute.xlu1 %89 }
 0x113   :  { %v94_v30 = vadd.f32 %v90_v29, %v61_v16 }
 0x115   :  { %99 = vrot.lane.b32.xlu2 %v94_v30, %s192_s1 }
 0x16f   :  { %v100_v32 = vpop.permute.xlu2 %99 }
 0x170   :  { %v108_v33 = vsel %vm106_vm1, %v105_v31, %v100_v32 }
 0x171   :  { %111 = vst.msk [vmem:[#allocation2 + $0x8] sm:$0xff] %vm109_vm3, %v108_v33 }
 0x17f   :  { %v98_v35 = vpop.permute.xlu1 %97 }
 0x180   :  { %v107_v36 = vsel %vm106_vm1, %v104_v34, %v98_v35 }
 0x181   :  { %110 = vst.msk [vmem:[#allocation2] sm:$0xff] %vm109_vm3, %v107_v36 }
 0x182   :  { %124 = dma.vmem_to_hbm [thread:$0]  %s117_s25, 256, %s119_s28, [#allocation3], %s194_s29, %s194_s29, %s190_s23  }
 0x183   :  { %188 = dma.done.wait [#allocation3], 256  }
 0x184   :  { %189 = vsyncadd [#allocation3], 4294967040 }
 0x185   :  { %129 = vsyncpa [#allocation3], 1 }

</bundles_post_ra>
